<compile_context>
chip_gen: v7x
topology: tpu7x:2x2x1
jax: 0.10.0
libtpu: 0.0.40
codegen_flags: <defaults>
</compile_context>

<pallas_src>
import functools

import jax
import jax.numpy as jnp
import numpy as np
from jax.experimental import pallas as pl
from jax.experimental.pallas import tpu as pltpu


def _round_up(x, m):
    return ((x + m - 1) // m) * m


# --------------------------------------------------------------------------------------
# Kernel
# --------------------------------------------------------------------------------------
def _gin_net_kernel(b0_ref, wbig_ref, *rest,
                    num_fields, num_subspaces, num_layers, slot):
    """Fused multi-layer GeneralizedInteractionNet on one (TB, F*D) batch tile.

    rest = (wp_1, ..., wp_{L-1}, out_ref)
      wp_l: (slot, S_l*slot) packed "interaction" RHS for layer l >= 1
            (the layer-0 P path is folded into wbig since its LHS is b0).
    """
    out_ref = rest[-1]
    wp_refs = rest[:-1]
    F, O, L = num_fields, num_subspaces, num_layers

    # ONE wide MXU matmul: all Q terms (every layer) + layer-0 P terms, from b0.
    # Every (layer, subspace) group occupies its own 128-aligned lane slot.
    b0 = b0_ref[...]                                          # (TB, F*D) bf16
    big = jnp.dot(b0, wbig_ref[...],
                  preferred_element_type=jnp.float32)         # (TB, N_big) f32

    # ---- layer 0 (input subspaces = F) ----
    p = big[:, : F * slot]
    q = big[:, F * slot: 2 * F * slot]
    r = p * q                                                 # f32 elementwise (VPU)
    bi = r[:, :slot]
    for s in range(1, F):                                     # static unroll, aligned slices
        bi = bi + r[:, s * slot:(s + 1) * slot]               # (TB, slot); lanes >= O*D are 0

    # ---- layers >= 1 (input subspaces = O) ----
    off = 2 * F * slot
    for l in range(1, L):
        q = big[:, off: off + O * slot]
        off += O * slot
        p = jnp.dot(bi.astype(jnp.bfloat16), wp_refs[l - 1][...],
                    preferred_element_type=jnp.float32)       # (TB, O*slot) f32
        r = p * q
        nxt = r[:, :slot]
        for s in range(1, O):
            nxt = nxt + r[:, s * slot:(s + 1) * slot]
        bi = nxt

    out_ref[...] = bi                                         # lane-dense (TB, slot) slab store


# --------------------------------------------------------------------------------------
# Weight packing (run once per parameter set — hoisted out of the per-call path)
# --------------------------------------------------------------------------------------
def pack_gin_weights(params, num_fields, embedding_dim, *, dtype=jnp.bfloat16, lane=128):
    """Pack per-layer (W, alpha, h) into MXU-friendly, lane-aligned RHS matrices.

    Returns:
      w_big: (F*D, N_big) bf16 — RHS of the single fused b0-LHS matmul.
             Column layout (each subspace in its own `slot`-wide 128-aligned group):
               [ P_layer0 (F slots) | Q_layer0 (F slots) | Q_layer1 (O slots) | ... | 0-pad ]
      wps:   tuple of (slot, S_l*slot) bf16 RHS for the per-layer (l >= 1) P matmuls.
      slot:  per-subspace column-group width = round_up(O*D, 128).
    """
    F, D = num_fields, embedding_dim
    O = params[0][0].shape[0]
    OD = O * D
    slot = _round_up(OD, lane)

    def wh_cat(W, h):
        # [d, o*D+h'] = W[o, h', d] * h[o, d]
        wh = W.astype(jnp.float32) * h[:, :, 0].astype(jnp.float32)[:, None, :]   # (O, D, D)
        return jnp.transpose(wh, (2, 0, 1)).reshape(D, OD)

    def pad_cols(x):  # (..., OD) -> (..., slot)
        return jnp.pad(x, [(0, 0)] * (x.ndim - 1) + [(0, slot - OD)])

    cols = []

    # layer-0 P blocks: row (f*D+d), slot s  ->  delta(f, s) * wh_cat0[d, :]
    whc0 = wh_cat(params[0][0], params[0][2])
    eye_f = jnp.eye(F, dtype=jnp.float32)
    p0 = eye_f[:, :, None, None] * whc0[None, None, :, :]          # (s, f, d, OD)
    p0 = pad_cols(p0).reshape(F, F * D, slot)
    for s in range(F):
        cols.append(p0[s])

    # Q blocks, every layer: row (f*D+h''), slot s -> alpha[s*F+f, o] * delta(h'', h')
    eye_d = jnp.eye(D, dtype=jnp.float32)
    for (W, alpha, h) in params:
        s_in = alpha.shape[0] // F
        a = alpha.astype(jnp.float32).reshape(s_in, F, O)           # [s, f, o]
        qb = a[:, :, None, :, None] * eye_d[None, None, :, None, :] # (s, f, h'', o, h')
        qb = pad_cols(qb.reshape(s_in, F * D, OD))                  # (s, F*D, slot)
        for s in range(s_in):
            cols.append(qb[s])

    w_big = jnp.concatenate(cols, axis=1)
    nbig = _round_up(w_big.shape[1], 256)                           # 256-wide MXU friendly
    w_big = jnp.pad(w_big, ((0, 0), (0, nbig - w_big.shape[1]))).astype(dtype)

    # per-layer (l >= 1) P-path RHS: row (s_in*D+d), slot s -> delta(s_in, s) * wh_cat_l[d, :]
    wps = []
    for (W, alpha, h) in params[1:]:
        s_in = O
        whc = wh_cat(W, h)
        eye_s = jnp.eye(s_in, dtype=jnp.float32)
        blk = eye_s[:, :, None, None] * whc[None, None, :, :]       # (s, s_in, d, OD)
        blk = pad_cols(blk)                                         # (s, s_in, d, slot)
        blk = jnp.transpose(blk, (1, 2, 0, 3)).reshape(s_in * D, s_in * slot)
        blk = jnp.pad(blk, ((0, slot - s_in * D), (0, 0))).astype(dtype)
        wps.append(blk)

    return w_big, tuple(wps), slot


# --------------------------------------------------------------------------------------
# Forward wrapper
# --------------------------------------------------------------------------------------
def gin_forward_packed(B0, w_big, wps, *, num_subspaces, tile_batch=512):
    """Forward pass using pre-packed weights (see pack_gin_weights)."""
    B, F, D = B0.shape
    O = num_subspaces
    OD = O * D
    FD = F * D
    L = len(wps) + 1
    slot = _round_up(OD, 128)

    # Batch tile: multiple of 16 (bf16 sublane packing); keep >= 2 grid steps when the
    # batch allows so the "parallel" axis can shard across v7x's two TensorCores.
    ALIGN = 16
    b_al = _round_up(B, ALIGN)
    tb = max(ALIGN, _round_up(tile_batch, ALIGN))
    if tb >= b_al:
        tb = _round_up(-(-b_al // 2), ALIGN) if b_al >= 2 * ALIGN else b_al
    b_pad = _round_up(B, tb)
    grid = b_pad // tb

    b0_flat = B0.reshape(B, FD).astype(jnp.bfloat16)
    if b_pad != B:
        b0_flat = jnp.pad(b0_flat, ((0, b_pad - B), (0, 0)))

    in_specs = [
        pl.BlockSpec((tb, FD), lambda i: (i, 0)),
        pl.BlockSpec(w_big.shape, lambda i: (0, 0)),      # constant tiny weight block
    ]
    for wp in wps:
        in_specs.append(pl.BlockSpec(wp.shape, lambda i: (0, 0)))

    kernel = functools.partial(_gin_net_kernel,
                               num_fields=F, num_subspaces=O,
                               num_layers=L, slot=slot)

    out = pl.pallas_call(
        kernel,
        out_shape=jax.ShapeDtypeStruct((b_pad, slot), jnp.float32),
        grid=(grid,),
        in_specs=in_specs,
        out_specs=pl.BlockSpec((tb, slot), lambda i: (i, 0)),
        compiler_params=pltpu.CompilerParams(
            dimension_semantics=("parallel",),
            vmem_limit_bytes=32 * 1024 * 1024),
    )(b0_flat, w_big, *wps)

    return out[:B, :OD].reshape(B, O, D)


def generalized_interaction_net(B0, params, *, tile_batch=512):
    """Convenience wrapper: pack + forward (for repeated calls, pack once and use
    gin_forward_packed directly)."""
    if not params:
        return B0
    _, F, D = B0.shape
    O = params[0][0].shape[0]
    w_big, wps, _ = pack_gin_weights(params, F, D)
    return gin_forward_packed(B0, w_big, wps, num_subspaces=O, tile_batch=tile_batch)


# --------------------------------------------------------------------------------------
# Pure-JAX reference (mirrors the PyTorch ops exactly, f32)
# --------------------------------------------------------------------------------------
def _ref_layer(B0, Bi, W, alpha, h):
    b, F, D = B0.shape
    S = Bi.shape[1]
    B0t = jnp.tile(B0, (1, S, 1))                      # B_0.repeat(1, S, 1)
    Bit = jnp.repeat(Bi, F, axis=1)                    # B_i.repeat(1,1,F).view(b,-1,D)
    outer = jnp.einsum('bnh,bnd->bnhd', B0t, Bit)
    fusion = jnp.einsum('bnhd,no->bhdo', outer, alpha)             # matmul(perm(0,2,3,1), alpha)
    fusion = W[None] * jnp.transpose(fusion, (0, 3, 1, 2))         # W * perm(0,3,1,2)
    return jnp.einsum('bohd,od->boh', fusion, h[:, :, 0])          # matmul(fusion, h).squeeze(-1)


def _ref_net(B0, params):
    Bi = B0
    for (W, alpha, h) in params:
        Bi = _ref_layer(B0, Bi, W, alpha, h)
    return Bi


def _init_params(key, num_layers, num_subspaces, num_fields, embedding_dim):
    """Deterministic init: module defaults (eye / ones) plus a small perturbation."""
    params = []
    for i in range(num_layers):
        in_sub = num_fields if i == 0 else num_subspaces
        key, k1, k2, k3 = jax.random.split(key, 4)
        W = (jnp.tile(jnp.eye(embedding_dim, dtype=jnp.float32)[None], (num_subspaces, 1, 1))
             + 0.1 * jax.random.normal(k1, (num_subspaces, embedding_dim, embedding_dim), jnp.float32))
        alpha = (jnp.ones((in_sub * num_fields, num_subspaces), jnp.float32)
                 + 0.1 * jax.random.normal(k2, (in_sub * num_fields, num_subspaces), jnp.float32))
        h = (jnp.ones((num_subspaces, embedding_dim, 1), jnp.float32)
             + 0.1 * jax.random.normal(k3, (num_subspaces, embedding_dim, 1), jnp.float32))
        params.append((W, alpha, h))
    return params


if __name__ == "__main__":
    batch = 100            # not a multiple of the tile: exercises the pad + auto-split path
    num_fields = 6
    embedding_dim = 16
    num_subspaces = 3
    num_layers = 2

    key = jax.random.PRNGKey(0)
    key, kx = jax.random.split(key)
    B0 = jax.random.normal(kx, (batch, num_fields, embedding_dim), jnp.float32)
    params = _init_params(key, num_layers, num_subspaces, num_fields, embedding_dim)

    # Pack the parameters ONCE, outside the per-call jit path (perf-review item).
    w_big, wps, _ = pack_gin_weights(params, num_fields, embedding_dim)

    fwd = jax.jit(functools.partial(gin_forward_packed,
                                    num_subspaces=num_subspaces, tile_batch=512))
    out = jax.block_until_ready(fwd(B0, w_big, wps))

    ref = _ref_net(B0, params)
    # bf16 matmul operands (f32 accumulation / elementwise) -> tolerance scaled to output range.
    scale = float(jnp.max(jnp.abs(ref)))
    np.testing.assert_allclose(np.asarray(out), np.asarray(ref),
                               rtol=2e-2, atol=2e-2 * scale)

    print("KERNEL_OK")
</pallas_src>

<mosaic_0001>
module attributes {stable_mosaic.version = 11 : i64} {
  func.func @_gin_net_kernel(%arg0: i32, %arg1: memref<64x96xbf16, #tpu.memory_space<vmem>>, %arg2: memref<96x2048xbf16, #tpu.memory_space<vmem>>, %arg3: memref<128x384xbf16, #tpu.memory_space<vmem>>, %arg4: memref<64x128xf32, #tpu.memory_space<vmem>>) attributes {dimension_semantics = [#tpu.dimension_semantics<parallel>], iteration_bounds = array<i64: 2>, scalar_prefetch = 0 : i64, scratch_operands = 0 : i64, tpu.core_type = #tpu.core_type<tc>, window_params = [{transform_indices = @transform_0, window_bounds = array<i64: 64, 96>}, {pipeline_mode = #tpu.pipeline_mode<synchronous>, transform_indices = @transform_1, window_bounds = array<i64: 96, 2048>}, {pipeline_mode = #tpu.pipeline_mode<synchronous>, transform_indices = @transform_2, window_bounds = array<i64: 128, 384>}, {transform_indices = @transform_3, window_bounds = array<i64: 64, 128>}]} {
    %c0 = arith.constant 0 : index
    %c0_0 = arith.constant 0 : index
    %0 = vector.load %arg1[%c0, %c0_0] : memref<64x96xbf16, #tpu.memory_space<vmem>>, vector<64x96xbf16>
    %c0_1 = arith.constant 0 : index
    %c0_2 = arith.constant 0 : index
    %1 = vector.load %arg2[%c0_1, %c0_2] : memref<96x2048xbf16, #tpu.memory_space<vmem>>, vector<96x2048xbf16>
    %cst = arith.constant dense<0.000000e+00> : vector<64x2048xf32>
    %2 = tpu.matmul %0, %1, %cst {dimension_numbers = #tpu.dot_dimension_numbers<[1], [0], [0], [1], [0, 0, 1, 1], [], []>} : vector<64x96xbf16>, vector<96x2048xbf16>, vector<64x2048xf32> -> vector<64x2048xf32>
    %3 = vector.extract_strided_slice %2 {offsets = [0, 0], sizes = [64, 768], strides = [1, 1]} : vector<64x2048xf32> to vector<64x768xf32>
    %4 = vector.extract_strided_slice %2 {offsets = [0, 768], sizes = [64, 768], strides = [1, 1]} : vector<64x2048xf32> to vector<64x768xf32>
    %5 = arith.mulf %3, %4 : vector<64x768xf32>
    %6 = vector.extract_strided_slice %5 {offsets = [0, 0], sizes = [64, 128], strides = [1, 1]} : vector<64x768xf32> to vector<64x128xf32>
    %7 = vector.extract_strided_slice %5 {offsets = [0, 128], sizes = [64, 128], strides = [1, 1]} : vector<64x768xf32> to vector<64x128xf32>
    %8 = arith.addf %6, %7 : vector<64x128xf32>
    %9 = vector.extract_strided_slice %5 {offsets = [0, 256], sizes = [64, 128], strides = [1, 1]} : vector<64x768xf32> to vector<64x128xf32>
    %10 = arith.addf %8, %9 : vector<64x128xf32>
    %11 = vector.extract_strided_slice %5 {offsets = [0, 384], sizes = [64, 128], strides = [1, 1]} : vector<64x768xf32> to vector<64x128xf32>
    %12 = arith.addf %10, %11 : vector<64x128xf32>
    %13 = vector.extract_strided_slice %5 {offsets = [0, 512], sizes = [64, 128], strides = [1, 1]} : vector<64x768xf32> to vector<64x128xf32>
    %14 = arith.addf %12, %13 : vector<64x128xf32>
    %15 = vector.extract_strided_slice %5 {offsets = [0, 640], sizes = [64, 128], strides = [1, 1]} : vector<64x768xf32> to vector<64x128xf32>
    %16 = arith.addf %14, %15 : vector<64x128xf32>
    %17 = vector.extract_strided_slice %2 {offsets = [0, 1536], sizes = [64, 384], strides = [1, 1]} : vector<64x2048xf32> to vector<64x384xf32>
    %18 = arith.truncf %16 : vector<64x128xf32> to vector<64x128xbf16>
    %c0_3 = arith.constant 0 : index
    %c0_4 = arith.constant 0 : index
    %19 = vector.load %arg3[%c0_3, %c0_4] : memref<128x384xbf16, #tpu.memory_space<vmem>>, vector<128x384xbf16>
    %cst_5 = arith.constant dense<0.000000e+00> : vector<64x384xf32>
    %20 = tpu.matmul %18, %19, %cst_5 {dimension_numbers = #tpu.dot_dimension_numbers<[1], [0], [0], [1], [0, 0, 1, 1], [], []>} : vector<64x128xbf16>, vector<128x384xbf16>, vector<64x384xf32> -> vector<64x384xf32>
    %21 = arith.mulf %20, %17 : vector<64x384xf32>
    %22 = vector.extract_strided_slice %21 {offsets = [0, 0], sizes = [64, 128], strides = [1, 1]} : vector<64x384xf32> to vector<64x128xf32>
    %23 = vector.extract_strided_slice %21 {offsets = [0, 128], sizes = [64, 128], strides = [1, 1]} : vector<64x384xf32> to vector<64x128xf32>
    %24 = arith.addf %22, %23 : vector<64x128xf32>
    %25 = vector.extract_strided_slice %21 {offsets = [0, 256], sizes = [64, 128], strides = [1, 1]} : vector<64x384xf32> to vector<64x128xf32>
    %26 = arith.addf %24, %25 : vector<64x128xf32>
    %c0_6 = arith.constant 0 : index
    %c0_7 = arith.constant 0 : index
    %27 = vector.load %arg4[%c0_6, %c0_7] : memref<64x128xf32, #tpu.memory_space<vmem>>, vector<64x128xf32>
    tpu.vector_store %arg4[%c0_6, %c0_7], %26 {strides = array<i32>} : memref<64x128xf32, #tpu.memory_space<vmem>>, vector<64x128xf32>,
    return
  }
  func.func @transform_0(%arg0: i32) -> (i32, i32) {
    %c0_i32 = arith.constant 0 : i32
    %c0_i32_0 = arith.constant 0 : i32
    return %arg0, %c0_i32 : i32, i32
  }
  func.func @transform_1(%arg0: i32) -> (i32, i32) {
    %c0_i32 = arith.constant 0 : i32
    %c0_i32_0 = arith.constant 0 : i32
    %c0_i32_1 = arith.constant 0 : i32
    return %c0_i32, %c0_i32_0 : i32, i32
  }
  func.func @transform_2(%arg0: i32) -> (i32, i32) {
    %c0_i32 = arith.constant 0 : i32
    %c0_i32_0 = arith.constant 0 : i32
    %c0_i32_1 = arith.constant 0 : i32
    return %c0_i32, %c0_i32_0 : i32, i32
  }
  func.func @transform_3(%arg0: i32) -> (i32, i32) {
    %c0_i32 = arith.constant 0 : i32
    %c0_i32_0 = arith.constant 0 : i32
    return %arg0, %c0_i32 : i32, i32
  }
}

</mosaic_0001>

<bundles_post_ra>
// kernel: gin_forward_packed.1
= control target key start
LH: loop header
LB: loop body
LE: loop exit
PB: predicated region body
PF: predicated region fallthrough
CT: control target
= control target key end

     0   :  { %8 = vsyncpa [#allocation3], 0  ;;  %s2216_s12 = smov 0   ;;  %s2601_s0 = inlined_call_operand.vmem [shape: bf16[128,96], index: 0, kind: input, shape index: {}]   ;;  %s2602_s1 = inlined_call_operand.hbm [shape: bf16[96,2048], index: 1, kind: input, shape index: {}]   ;;  %s2603_s2 = inlined_call_operand.vmem [shape: bf16[128,384], index: 2, kind: input, shape index: {}]   ;;  %s2604_s3 = inlined_call_operand.vmem [shape: f32[128,128], index: 3, kind: output, shape index: {}]  }
   0x1 LB: > { %s1889_s13 = sadd.s32 4294967295, %s2190_s12   ;;  %p1891_p0 = scmp.ge.s32.totalorder %s2190_s12, 1  ;;  %s2190_s12 = sphi %s2216_s12, %s14_s12  }
   0x2   : > { %p113_p1 = scmp.lt.s32.totalorder %s2190_s12, 3  ;;  %s2192_s14 = smov [#allocation2]  }
   0x3   : > { %s125_s15 = sshll.u32 %s2192_s14, 4  ;;  %p2230_p3 = scmp.eq.s32.totalorder %s1889_s13, 0  ;;  %s126_s15 = int_to_ptr.vmem [resolvable:$true] %s125_s15 }
   0x4   : > { %p2224_p2 = pnand %p1891_p0, %p113_p1  ;;  %s2152_s21 = scalar_lea.hbm %s2602_s1, 12288 }
   0x5   : > { %s2609_s17 = scalar_select %p2230_p3, 1, 0 }
   0x6   : > { %s2608_s16 = scalar_select %p2224_p2, 1, 0 }
   0x7   : > { %p2098_p4 = pneg %p2224_p2  ;;  %p2153_p6 = scmp.ne.s32.totalorder %s2602_s1, %s2152_s21 }
   0x8   : > { %p2159_p10 = scmp.lt.u32.totalorder %s2152_s21, %s2602_s1 }
   0x9   : > { %p2238_p5 = pnand %p2230_p3, %p2098_p4 }
   0xb   : > { %p2154_p7 = pneg %p2238_p5 }
   0xd   : > { %p2155_p8 = pnand %p2154_p7, %p2153_p6 }
   0xf   : > { %p2156_p9 = pneg %p2155_p8 }
  0x11   : > { %p2161_p11 = pnand %p2159_p10, %p2156_p9 }
  0x13   : > { %2164 = shalt.err (!%p2161_p11)
}
  0x14   : > { %s2165_s26 = scalar_lea.vmem %s126_s15, 12288  ;;  %p2173_p1 = scmp.lt.s32.totalorder %s126_s15, %s126_s15 }
  0x15   : > { %p2166_p12 = scmp.ne.s32.totalorder %s126_s15, %s2165_s26  ;;  %p2174_p4 = scmp.lt.s32.totalorder %s2165_s26, %s2165_s26 }
  0x17   : > { %p2168_p13 = pnand %p2166_p12, %p2154_p7  ;;  %p2175_p3 = por %p2174_p4, %p2173_p1 }
  0x19   : > { %p2169_p0 = pneg %p2168_p13 }
  0x1b   : > { %p2176_p2 = pnand %p2175_p3, %p2169_p0 }
  0x1d   : > { %2179 = shalt.err (!%p2176_p2)
}
  0x1e   : > { %s2193_s27 = smov 1024   ;;  %s2194_s28 = smov 64  }
  0x1f   : > { %2101 = dma.hbm_to_vmem [thread:$0]  (!%p2238_p5), %s2602_s1, 12288, %s126_s15, [#allocation3], %s2193_s27, %s2193_s27, %s2194_s28  }
  0x20   : > { %p2611_p6 = scmp.ne.s32.totalorder %s2608_s16, 0 }
  0x21   : > { %p2612_p8 = scmp.ne.s32.totalorder (!%p2611_p6), %s2609_s17, 0 }
  0x22   : > { %153 = sbr.rel (%p2611_p6) target bundleno = 606 (0x25e), region = 32 }
  0x29   : > { %2185 = dma.done.wait (%p2612_p8), [#allocation3], 12288  }
  0x2a   : > { %2187 = vsyncadd (%p2612_p8), [#allocation3], 4294955008  ;;  %s1896_s4 = sshll.u32 %s1889_s13, 3  ;;  %v2195_v0 = vmov 0   ;;  %v198_v1 = vld [vmem:[#allocation2] sm:$0xff]  ;;  %v199_v3 = vld [vmem:[#allocation2 + $0x8] sm:$0xff] }
  0x2b   : > { %839 = vmatprep.mubr.bf16.mxu0 %v2195_v0  ;;  %912 = vmatprep.mubr.bf16.mxu1 %v2195_v0  ;;  %p178_p2 = scmp.lt.s32.totalorder %s1896_s4, 15  ;;  %v206_v2 = vld [vmem:[#allocation2 + $0x40] sm:$0xff]  ;;  %v207_v5 = vld [vmem:[#allocation2 + $0x48] sm:$0xff]  ;;  %v200_v47 = vld [vmem:[#allocation2 + $0x10] sm:$0xff]  ;;  %vm794_vm0 = vcmask 785408  }
  0x2c   : > { %v1905_v4 = vcombine.high %v198_v1, %v206_v2  ;;  %v1904_v6 = vcombine.low %v198_v1, %v206_v2  ;;  %v214_v7 = vld [vmem:[#allocation2 + $0x80] sm:$0xff]  ;;  %v1907_v9 = vcombine.high %v199_v3, %v207_v5  ;;  %v1906_v10 = vcombine.low %v199_v3, %v207_v5  ;;  %v215_v12 = vld [vmem:[#allocation2 + $0x88] sm:$0xff]  ;;  %v208_v48 = vld [vmem:[#allocation2 + $0x50] sm:$0xff] }
  0x2d   : > { %s2614_s4 = smov (!%p178_p2, %s1896_s4), 15  ;;  %v222_v8 = vld [vmem:[#allocation2 + $0xc0] sm:$0xff]  ;;  %v223_v13 = vld [vmem:[#allocation2 + $0xc8] sm:$0xff]  ;;  %v201_v49 = vld [vmem:[#allocation2 + $0x18] sm:$0xff]  ;;  %v1909_v53 = vcombine.high %v200_v47, %v208_v48  ;;  %v1908_v58 = vcombine.low %v200_v47, %v208_v48 }
  0x2e   : > { %v1921_v11 = vcombine.high %v214_v7, %v222_v8  ;;  %v230_v14 = vld [vmem:[#allocation2 + $0x100] sm:$0xff]  ;;  %807 = vmatprep.subr.bf16.mxu0 %v1905_v4  ;;  %v1923_v15 = vcombine.high %v215_v12, %v223_v13  ;;  %v231_v17 = vld [vmem:[#allocation2 + $0x108] sm:$0xff]  ;;  %880 = vmatprep.subr.bf16.mxu1 %v1907_v9  ;;  %v1920_v19 = vcombine.low %v214_v7, %v222_v8  ;;  %s1897_s5 = sshll.u32 %s2614_s4, 2  ;;  %v209_v50 = vld [vmem:[#allocation2 + $0x58] sm:$0xff]  ;;  %s1899_s7 = sshll.u32 %s2614_s4, 3 }
  0x2f   : > { %v238_v16 = vld [vmem:[#allocation2 + $0x140] sm:$0xff]  ;;  %v239_v18 = vld [vmem:[#allocation2 + $0x148] sm:$0xff]  ;;  %808 = vmatpush1.bf16.msra.mxu0 %v1904_v6  ;;  %881 = vmatpush1.bf16.msra.mxu1 %v1906_v10  ;;  %v1922_v20 = vcombine.low %v215_v12, %v223_v13  ;;  %s2274_s8 = scalar_lea.vmem %s2601_s0, %s1897_s5  ;;  %v1911_v54 = vcombine.high %v201_v49, %v209_v50  ;;  %v216_v55 = vld [vmem:[#allocation2 + $0x90] sm:$0xff]  ;;  %v1910_v61 = vcombine.low %v201_v49, %v209_v50  ;;  %s2583_s10 = scalar_lea.vmem %s2604_s3, %s1899_s7 }
  0x30   : > { %809 = vmatprep.subr.bf16.mxu0 %v1921_v11  ;;  %v1937_v21 = vcombine.high %v230_v14, %v238_v16  ;;  %882 = vmatprep.subr.bf16.mxu1 %v1923_v15  ;;  %v1939_v22 = vcombine.high %v231_v17, %v239_v18  ;;  %v246_v23 = vld [vmem:[#allocation2 + $0x180] sm:$0xff]  ;;  %v247_v25 = vld [vmem:[#allocation2 + $0x188] sm:$0xff]  ;;  %v1936_v27 = vcombine.low %v230_v14, %v238_v16  ;;  %v224_v56 = vld [vmem:[#allocation2 + $0xd0] sm:$0xff] }
  0x31   : > { %v254_v24 = vld [vmem:[#allocation2 + $0x1c0] sm:$0xff]  ;;  %v255_v26 = vld [vmem:[#allocation2 + $0x1c8] sm:$0xff]  ;;  %v1938_v28 = vcombine.low %v231_v17, %v239_v18  ;;  %v217_v59 = vld [vmem:[#allocation2 + $0x98] sm:$0xff]  ;;  %v1925_v62 = vcombine.high %v216_v55, %v224_v56  ;;  %v1924_v5 = vcombine.low %v216_v55, %v224_v56 }
  0x32   : > { %v1953_v29 = vcombine.high %v246_v23, %v254_v24  ;;  %v1955_v30 = vcombine.high %v247_v25, %v255_v26  ;;  %v262_v31 = vld [vmem:[#allocation2 + $0x200] sm:$0xff]  ;;  %v263_v33 = vld [vmem:[#allocation2 + $0x208] sm:$0xff]  ;;  %v1952_v35 = vcombine.low %v246_v23, %v254_v24  ;;  %v1954_v36 = vcombine.low %v247_v25, %v255_v26  ;;  %v225_v60 = vld [vmem:[#allocation2 + $0xd8] sm:$0xff] }
  0x33   : > { %810 = vmatpush1.bf16.msra.mxu0 %v1920_v19  ;;  %883 = vmatpush1.bf16.msra.mxu1 %v1922_v20  ;;  %v270_v32 = vld [vmem:[#allocation2 + $0x240] sm:$0xff]  ;;  %v271_v34 = vld [vmem:[#allocation2 + $0x248] sm:$0xff]  ;;  %v232_v63 = vld [vmem:[#allocation2 + $0x110] sm:$0xff]  ;;  %v1927_v2 = vcombine.high %v217_v59, %v225_v60  ;;  %v1926_v7 = vcombine.low %v217_v59, %v225_v60 }
  0x34   : > { %811 = vmatprep.subr.bf16.mxu0 %v1937_v21  ;;  %884 = vmatprep.subr.bf16.mxu1 %v1939_v22  ;;  %v1969_v37 = vcombine.high %v262_v31, %v270_v32  ;;  %v278_v38 = vld [vmem:[#allocation2 + $0x280] sm:$0xff]  ;;  %v1971_v39 = vcombine.high %v263_v33, %v271_v34  ;;  %v279_v41 = vld [vmem:[#allocation2 + $0x288] sm:$0xff]  ;;  %v1968_v43 = vcombine.low %v262_v31, %v270_v32  ;;  %v240_v1 = vld [vmem:[#allocation2 + $0x150] sm:$0xff] }
  0x35   : > { %v286_v40 = vld [vmem:[#allocation2 + $0x2c0] sm:$0xff]  ;;  %v287_v42 = vld [vmem:[#allocation2 + $0x2c8] sm:$0xff]  ;;  %v1970_v44 = vcombine.low %v263_v33, %v271_v34  ;;  %v233_v3 = vld [vmem:[#allocation2 + $0x118] sm:$0xff]  ;;  %v1941_v8 = vcombine.high %v232_v63, %v240_v1  ;;  %v1940_v14 = vcombine.low %v232_v63, %v240_v1 }
  0x36   : > { %v1985_v45 = vcombine.high %v278_v38, %v286_v40  ;;  %v1987_v46 = vcombine.high %v279_v41, %v287_v42  ;;  %v1984_v51 = vcombine.low %v278_v38, %v286_v40  ;;  %v1986_v52 = vcombine.low %v279_v41, %v287_v42  ;;  %v2277_v57 = vld [vmem:[%s2274_s8] sm:$0xff]   ;;  %v241_v4 = vld [vmem:[#allocation2 + $0x158] sm:$0xff]  ;;  %v2284_v6 = vld [vmem:[%s2274_s8 + $0x8] sm:$0xff]  }
  0x37   : > { %812 = vmatpush1.bf16.msra.mxu0 %v1936_v27  ;;  %885 = vmatpush1.bf16.msra.mxu1 %v1938_v28  ;;  %v248_v9 = vld [vmem:[#allocation2 + $0x190] sm:$0xff]  ;;  %v1943_v11 = vcombine.high %v233_v3, %v241_v4  ;;  %v249_v12 = vld [vmem:[#allocation2 + $0x198] sm:$0xff]  ;;  %v1942_v17 = vcombine.low %v233_v3, %v241_v4  ;;  %v211_v38 = vld [vmem:[#allocation2 + $0x68] sm:$0xff] }
  0x38   : > { %813 = vmatprep.subr.bf16.mxu0 %v1953_v29  ;;  %886 = vmatprep.subr.bf16.mxu1 %v1955_v30  ;;  %v256_v10 = vld [vmem:[#allocation2 + $0x1d0] sm:$0xff]  ;;  %v257_v13 = vld [vmem:[#allocation2 + $0x1d8] sm:$0xff]  ;;  %v219_v47 = vld [vmem:[#allocation2 + $0xa8] sm:$0xff] }
  0x39   : > { %v264_v15 = vld [vmem:[#allocation2 + $0x210] sm:$0xff]  ;;  %v1957_v18 = vcombine.high %v248_v9, %v256_v10  ;;  %v265_v19 = vld [vmem:[#allocation2 + $0x218] sm:$0xff]  ;;  %v1959_v21 = vcombine.high %v249_v12, %v257_v13  ;;  %v1956_v22 = vcombine.low %v248_v9, %v256_v10  ;;  %v1958_v24 = vcombine.low %v249_v12, %v257_v13  ;;  %v227_v48 = vld [vmem:[#allocation2 + $0xe8] sm:$0xff] }
  0x3a   : > { %v272_v16 = vld [vmem:[#allocation2 + $0x250] sm:$0xff]  ;;  %v273_v20 = vld [vmem:[#allocation2 + $0x258] sm:$0xff]  ;;  %v243_v55 = vld [vmem:[#allocation2 + $0x168] sm:$0xff] }
  0x3b   : > { %814 = vmatpush1.bf16.msra.mxu0 %v1952_v35  ;;  %887 = vmatpush1.bf16.msra.mxu1 %v1954_v36  ;;  %v1973_v23 = vcombine.high %v264_v15, %v272_v16  ;;  %v2295_v25 = vld [vmem:[%s2274_s8 + $0x10] sm:$0xff]   ;;  %v1975_v26 = vcombine.high %v265_v19, %v273_v20  ;;  %v281_v29 = vld [vmem:[#allocation2 + $0x298] sm:$0xff]  ;;  %v1972_v31 = vcombine.low %v264_v15, %v272_v16  ;;  %v202_v35 = vld [vmem:[#allocation2 + $0x20] sm:$0xff] }
  0x3c   : > { %815 = vmatprep.subr.bf16.mxu0 %v1969_v37  ;;  %888 = vmatprep.subr.bf16.mxu1 %v1971_v39  ;;  %v280_v27 = vld [vmem:[#allocation2 + $0x290] sm:$0xff]  ;;  %v289_v30 = vld [vmem:[#allocation2 + $0x2d8] sm:$0xff]  ;;  %v1974_v32 = vcombine.low %v265_v19, %v273_v20  ;;  %v210_v36 = vld [vmem:[#allocation2 + $0x60] sm:$0xff] }
  0x3d   : > { %v288_v28 = vld [vmem:[#allocation2 + $0x2d0] sm:$0xff]  ;;  %v1991_v34 = vcombine.high %v281_v29, %v289_v30  ;;  %v203_v37 = vld [vmem:[#allocation2 + $0x28] sm:$0xff]  ;;  %v1990_v40 = vcombine.low %v281_v29, %v289_v30  ;;  %v1913_v41 = vcombine.high %v202_v35, %v210_v36  ;;  %v2304_v42 = vld [vmem:[%s2274_s8 + $0x18] sm:$0xff]  }
  0x3e   : > { %v1989_v33 = vcombine.high %v280_v27, %v288_v28  ;;  %v1988_v39 = vcombine.low %v280_v27, %v288_v28  ;;  %v1914_v49 = vcombine.low %v203_v37, %v211_v38  ;;  %v251_v1 = vld [vmem:[#allocation2 + $0x1a8] sm:$0xff]  ;;  %v282_v15 = vld [vmem:[#allocation2 + $0x2a0] sm:$0xff]  ;;  %v212_v27 = vld [vmem:[#allocation2 + $0x70] sm:$0xff] }
  0x3f   : > { %816 = vmatpush1.bf16.msra.mxu0 %v1968_v43  ;;  %889 = vmatpush1.bf16.msra.mxu1 %v1970_v44  ;;  %v1915_v43 = vcombine.high %v203_v37, %v211_v38  ;;  %v218_v44 = vld [vmem:[#allocation2 + $0xa0] sm:$0xff]  ;;  %v267_v10 = vld [vmem:[#allocation2 + $0x228] sm:$0xff]  ;;  %v220_v30 = vld [vmem:[#allocation2 + $0xb0] sm:$0xff] }
  0x40   : > { %817 = vmatprep.subr.bf16.mxu0 %v1985_v45  ;;  %890 = vmatprep.subr.bf16.mxu1 %v1987_v46  ;;  %v226_v45 = vld [vmem:[#allocation2 + $0xe0] sm:$0xff]  ;;  %v1912_v46 = vcombine.low %v202_v35, %v210_v36  ;;  %v244_v35 = vld [vmem:[#allocation2 + $0x170] sm:$0xff]  ;;  %v205_v38 = vld [vmem:[#allocation2 + $0x38] sm:$0xff] }
  0x41   : > { %v1929_v50 = vcombine.high %v218_v44, %v226_v45  ;;  %v1928_v56 = vcombine.low %v218_v44, %v226_v45  ;;  %v290_v16 = vld [vmem:[#allocation2 + $0x2e0] sm:$0xff]  ;;  %v260_v44 = vld [vmem:[#allocation2 + $0x1f0] sm:$0xff] }
  0x43   : > { %818 = vmatpush1.bf16.msra.mxu0 %v1984_v51  ;;  %891 = vmatpush1.bf16.msra.mxu1 %v1986_v52  ;;  %v234_v51 = vld [vmem:[#allocation2 + $0x120] sm:$0xff] }
  0x44   : > { %953 = vmatprep.subr.bf16.mxu0 %v1909_v53  ;;  %1026 = vmatprep.subr.bf16.mxu1 %v1911_v54  ;;  %v242_v52 = vld [vmem:[#allocation2 + $0x160] sm:$0xff]  ;;  %v1931_v53 = vcombine.high %v219_v47, %v227_v48  ;;  %v235_v54 = vld [vmem:[#allocation2 + $0x128] sm:$0xff] }
  0x45   : > { %v1945_v59 = vcombine.high %v234_v51, %v242_v52  ;;  %v1947_v60 = vcombine.high %v235_v54, %v243_v55  ;;  %v1944_v63 = vcombine.low %v234_v51, %v242_v52  ;;  %v1946_v3 = vcombine.low %v235_v54, %v243_v55  ;;  %v268_v51 = vld [vmem:[#allocation2 + $0x230] sm:$0xff]  ;;  %v237_v55 = vld [vmem:[#allocation2 + $0x138] sm:$0xff] }
  0x46   : > { %2000 = vmatmul.mubr.msk.bf16.vlgmr.msra.gmra.mrb[0].mxu0 %vm794_vm0, %v2277_v57  ;;  %2004 = vmatmul.mubr.msk.bf16.vlgmr.msra.gmra.mrb[0].mxu1 %vm794_vm0, %v2277_v57  ;;  %v276_v52 = vld [vmem:[#allocation2 + $0x270] sm:$0xff] }
  0x47   : > { %954 = vmatpush1.bf16.msra.mxu0 %v1908_v58  ;;  %1027 = vmatpush1.bf16.msra.mxu1 %v1910_v61  ;;  %v1930_v58 = vcombine.low %v219_v47, %v227_v48  ;;  %v250_v61 = vld [vmem:[#allocation2 + $0x1a0] sm:$0xff]  ;;  %v221_v47 = vld [vmem:[#allocation2 + $0xb8] sm:$0xff]  ;;  %v1980_v54 = vcombine.low %v268_v51, %v276_v52 }
  0x48   : > { %955 = vmatprep.subr.bf16.mxu0 %v1925_v62  ;;  %849 = vmatprep.mubr.bf16.mxu0 %v2195_v0  ;;  %v258_v62 = vld [vmem:[#allocation2 + $0x1e0] sm:$0xff]  ;;  %v229_v48 = vld [vmem:[#allocation2 + $0xf8] sm:$0xff] }
  0x49   : > { %922 = vmatprep.mubr.bf16.mxu1 %v2195_v0  ;;  %1028 = vmatprep.subr.bf16.mxu1 %v1927_v2  ;;  %v259_v2 = vld [vmem:[#allocation2 + $0x1e8] sm:$0xff]  ;;  %v1961_v4 = vcombine.high %v250_v61, %v258_v62  ;;  %v1960_v9 = vcombine.low %v250_v61, %v258_v62  ;;  %v292_v61 = vld [vmem:[#allocation2 + $0x2f0] sm:$0xff] }
  0x4a   : > { %v1962_v13 = vcombine.low %v251_v1, %v259_v2 }
  0x4b   : > { %956 = vmatpush1.bf16.msra.mxu0 %v1924_v5  ;;  %1029 = vmatpush1.bf16.msra.mxu1 %v1926_v7  ;;  %v266_v5 = vld [vmem:[#allocation2 + $0x220] sm:$0xff] }
  0x4c   : > { %957 = vmatprep.subr.bf16.mxu0 %v1941_v8  ;;  %1030 = vmatprep.subr.bf16.mxu1 %v1943_v11  ;;  %v274_v7 = vld [vmem:[#allocation2 + $0x260] sm:$0xff]  ;;  %v1963_v8 = vcombine.high %v251_v1, %v259_v2  ;;  %v275_v11 = vld [vmem:[#allocation2 + $0x268] sm:$0xff]  ;;  %v253_v1 = vld [vmem:[#allocation2 + $0x1b8] sm:$0xff] }
  0x4d   : > { %v1977_v12 = vcombine.high %v266_v5, %v274_v7  ;;  %v1976_v19 = vcombine.low %v266_v5, %v274_v7  ;;  %v1978_v20 = vcombine.low %v267_v10, %v275_v11  ;;  %v261_v2 = vld [vmem:[#allocation2 + $0x1f8] sm:$0xff] }
  0x4e   : > { %2001 = vmatmul.mubr.msk.bf16.gmra.mrb[4].mxu0 %vm794_vm0, %v2284_v6  ;;  %2005 = vmatmul.mubr.msk.bf16.gmra.mrb[4].mxu1 %vm794_vm0, %v2284_v6  ;;  %v269_v5 = vld [vmem:[#allocation2 + $0x238] sm:$0xff] }
  0x4f   : > { %958 = vmatpush1.bf16.msra.mxu0 %v1940_v14  ;;  %859 = vmatprep.mubr.bf16.mxu0 %v2195_v0  ;;  %v1979_v14 = vcombine.high %v267_v10, %v275_v11  ;;  %v277_v7 = vld [vmem:[#allocation2 + $0x278] sm:$0xff]  ;;  %v2122_v10 = vld [vmem:[%s2603_s2 + $0x4] ss:$12 sps:$4 sm:$0xff]   ;;  %v2120_v11 = vld [vmem:[%s2603_s2] ss:$12 sps:$4 sm:$0xff]  }
  0x50   : > { %932 = vmatprep.mubr.bf16.mxu1 %v2195_v0  ;;  %959 = vmatprep.subr.bf16.mxu0 %v1957_v18  ;;  %v291_v18 = vld [vmem:[#allocation2 + $0x2e8] sm:$0xff] }
  0x51   : > { %1031 = vmatpush1.bf16.msra.mxu1 %v1942_v17  ;;  %v283_v17 = vld [vmem:[#allocation2 + $0x2a8] sm:$0xff] }
  0x52   : > { %1032 = vmatprep.subr.bf16.mxu1 %v1959_v21  ;;  %v1993_v21 = vcombine.high %v282_v15, %v290_v16 }
  0x53   : > { %960 = vmatpush1.bf16.msra.mxu0 %v1956_v22  ;;  %v1995_v22 = vcombine.high %v283_v17, %v291_v18 }
  0x54   : > { %961 = vmatprep.subr.bf16.mxu0 %v1973_v23  ;;  %v1992_v23 = vcombine.low %v282_v15, %v290_v16  ;;  %v2125_v16 = vld [vmem:[%s2603_s2 + $0x1c] ss:$12 sps:$4 sm:$0xff]  }
  0x55   : > { %1033 = vmatpush1.bf16.msra.mxu1 %v1958_v24  ;;  %v1994_v24 = vcombine.low %v283_v17, %v291_v18  ;;  %v2123_v17 = vld [vmem:[%s2603_s2 + $0x18] ss:$12 sps:$4 sm:$0xff]   ;;  %v2128_v18 = vld [vmem:[%s2603_s2 + $0x34] ss:$12 sps:$4 sm:$0xff]  }
  0x56   : > { %2002 = vmatmul.mubr.msk.bf16.gmra.mrb[8].mxu0 %vm794_vm0, %v2295_v25  ;;  %1034 = vmatprep.subr.bf16.mxu1 %v1975_v26  ;;  %v204_v26 = vld [vmem:[#allocation2 + $0x30] sm:$0xff] }
  0x57   : > { %2006 = vmatmul.mubr.msk.bf16.gmra.mrb[8].mxu1 %vm794_vm0, %v2295_v25  ;;  %869 = vmatprep.mubr.bf16.mxu0 %v2195_v0  ;;  %v1916_v28 = vcombine.low %v204_v26, %v212_v27  ;;  %v1917_v29 = vcombine.high %v204_v26, %v212_v27  ;;  %v2134_v26 = vld [vmem:[%s2603_s2 + $0x60] ss:$12 sps:$4 sm:$0xff]   ;;  %v2140_v27 = vld [vmem:[%s2603_s2 + $0x7c] ss:$12 sps:$4 sm:$0xff]  }
  0x58   : > { %942 = vmatprep.mubr.bf16.mxu1 %v2195_v0  ;;  %962 = vmatpush1.bf16.msra.mxu0 %v1972_v31  ;;  %v228_v31 = vld [vmem:[#allocation2 + $0xf0] sm:$0xff] }
  0x59   : > { %1035 = vmatpush1.bf16.msra.mxu1 %v1974_v32  ;;  %963 = vmatprep.subr.bf16.mxu0 %v1989_v33  ;;  %v1932_v32 = vcombine.low %v220_v30, %v228_v31  ;;  %v1933_v33 = vcombine.high %v220_v30, %v228_v31  ;;  %v2145_v30 = vld [vmem:[%s2603_s2 + $0x68] ss:$12 sps:$4 sm:$0xff]   ;;  %v2142_v31 = vld [vmem:[%s2603_s2 + $0x90] ss:$12 sps:$4 sm:$0xff]  }
  0x5a   : > { %1036 = vmatprep.subr.bf16.mxu1 %v1991_v34  ;;  %v236_v34 = vld [vmem:[#allocation2 + $0x130] sm:$0xff] }
  0x5b   : > { %v1948_v36 = vcombine.low %v236_v34, %v244_v35  ;;  %v1949_v37 = vcombine.high %v236_v34, %v244_v35  ;;  %v2150_v34 = vld [vmem:[%s2603_s2 + $0x98] ss:$12 sps:$4 sm:$0xff]   ;;  %v2151_v35 = vld [vmem:[%s2603_s2 + $0xb0] ss:$12 sps:$4 sm:$0xff]  }
  0x5c   : > { %964 = vmatpush1.bf16.msra.mxu0 %v1988_v39  ;;  %v213_v39 = vld [vmem:[#allocation2 + $0x78] sm:$0xff] }
  0x5d   : > { %1037 = vmatpush1.bf16.msra.mxu1 %v1990_v40  ;;  %1099 = vmatprep.subr.bf16.mxu0 %v1913_v41  ;;  %v252_v40 = vld [vmem:[#allocation2 + $0x1b0] sm:$0xff]  ;;  %v1918_v41 = vcombine.low %v205_v38, %v213_v39 }
  0x5e   : > { %2003 = vmatmul.mubr.msk.bf16.gmra.mrb[12].mxu0 %vm794_vm0, %v2304_v42  ;;  %1172 = vmatprep.subr.bf16.mxu1 %v1915_v43  ;;  %v1919_v43 = vcombine.high %v205_v38, %v213_v39  ;;  %v1964_v45 = vcombine.low %v252_v40, %v260_v44 }
  0x5f   : > { %2007 = vmatmul.mubr.msk.bf16.gmra.mrb[12].mxu1 %vm794_vm0, %v2304_v42  ;;  %985 = vmatprep.mubr.bf16.mxu0 %v2195_v0 }
  0x60   : > { %1058 = vmatprep.mubr.bf16.mxu1 %v2195_v0 }
  0x66   : > { %2008 = vmatmul.mubr.msk.bf16.vlgmr.msra.gmra.mrb[16].mxu0 %vm794_vm0, %v2277_v57 }
  0x67   : > { %2012 = vmatmul.mubr.msk.bf16.vlgmr.msra.gmra.mrb[16].mxu1 %vm794_vm0, %v2277_v57  ;;  %1100 = vmatpush1.bf16.msra.mxu0 %v1912_v46  ;;  %v1965_v46 = vcombine.high %v252_v40, %v260_v44 }
  0x68   : > { %1173 = vmatpush1.bf16.msra.mxu1 %v1914_v49  ;;  %1101 = vmatprep.subr.bf16.mxu0 %v1929_v50  ;;  %v1935_v49 = vcombine.high %v221_v47, %v229_v48  ;;  %v1934_v50 = vcombine.low %v221_v47, %v229_v48 }
  0x69   : > { %995 = vmatprep.mubr.bf16.mxu0 %v2195_v0  ;;  %1068 = vmatprep.mubr.bf16.mxu1 %v2195_v0 }
  0x6a   : > { %1174 = vmatprep.subr.bf16.mxu1 %v1931_v53  ;;  %v1981_v53 = vcombine.high %v268_v51, %v276_v52 }
  0x6b   : > { %1102 = vmatpush1.bf16.msra.mxu0 %v1928_v56  ;;  %v245_v56 = vld [vmem:[#allocation2 + $0x178] sm:$0xff] }
  0x6c   : > { %1103 = vmatprep.subr.bf16.mxu0 %v1945_v59  ;;  %1175 = vmatpush1.bf16.msra.mxu1 %v1930_v58  ;;  %v1951_v58 = vcombine.high %v237_v55, %v245_v56  ;;  %v1950_v59 = vcombine.low %v237_v55, %v245_v56 }
  0x6d   : > { %1176 = vmatprep.subr.bf16.mxu1 %v1947_v60  ;;  %v284_v60 = vld [vmem:[#allocation2 + $0x2b0] sm:$0xff] }
  0x6e   : > { %2009 = vmatmul.mubr.msk.bf16.gmra.mrb[20].mxu0 %vm794_vm0, %v2284_v6  ;;  %v1997_v62 = vcombine.high %v284_v60, %v292_v61 }
  0x6f   : > { %2013 = vmatmul.mubr.msk.bf16.gmra.mrb[20].mxu1 %vm794_vm0, %v2284_v6  ;;  %1104 = vmatpush1.bf16.msra.mxu0 %v1944_v63  ;;  %v1996_v63 = vcombine.low %v284_v60, %v292_v61 }
  0x70   : > { %1005 = vmatprep.mubr.bf16.mxu0 %v2195_v0  ;;  %1078 = vmatprep.mubr.bf16.mxu1 %v2195_v0 }
  0x71   : > { %1105 = vmatprep.subr.bf16.mxu0 %v1961_v4  ;;  %1177 = vmatpush1.bf16.msra.mxu1 %v1946_v3  ;;  %v1967_v3 = vcombine.high %v253_v1, %v261_v2  ;;  %v1966_v4 = vcombine.low %v253_v1, %v261_v2 }
  0x72   : > { %1178 = vmatprep.subr.bf16.mxu1 %v1963_v8  ;;  %v1983_v8 = vcombine.high %v269_v5, %v277_v7 }
  0x73   : > { %1106 = vmatpush1.bf16.msra.mxu0 %v1960_v9  ;;  %v1982_v9 = vcombine.low %v269_v5, %v277_v7 }
  0x74   : > { %1107 = vmatprep.subr.bf16.mxu0 %v1977_v12  ;;  %v285_v12 = vld [vmem:[#allocation2 + $0x2b8] sm:$0xff] }
  0x75   : > { %1179 = vmatpush1.bf16.msra.mxu1 %v1962_v13  ;;  %v293_v13 = vld [vmem:[#allocation2 + $0x2f8] sm:$0xff] }
  0x76   : > { %2010 = vmatmul.mubr.msk.bf16.gmra.mrb[24].mxu0 %vm794_vm0, %v2295_v25  ;;  %1180 = vmatprep.subr.bf16.mxu1 %v1979_v14  ;;  %v1999_v14 = vcombine.high %v285_v12, %v293_v13  ;;  %v1998_v15 = vcombine.low %v285_v12, %v293_v13 }
  0x77   : > { %2014 = vmatmul.mubr.msk.bf16.gmra.mrb[24].mxu1 %vm794_vm0, %v2295_v25  ;;  %1015 = vmatprep.mubr.bf16.mxu0 %v2195_v0 }
  0x78   : > { %1088 = vmatprep.mubr.bf16.mxu1 %v2195_v0  ;;  %1108 = vmatpush1.bf16.msra.mxu0 %v1976_v19  ;;  %v2129_v19 = vld [vmem:[%s2603_s2 + $0x8] ss:$12 sps:$4 sm:$0xff]  }
  0x79   : > { %1181 = vmatpush1.bf16.msra.mxu1 %v1978_v20  ;;  %1109 = vmatprep.subr.bf16.mxu0 %v1993_v21  ;;  %v2126_v20 = vld [vmem:[%s2603_s2 + $0x30] ss:$12 sps:$4 sm:$0xff]   ;;  %v2132_v21 = vld [vmem:[%s2603_s2 + $0x4c] ss:$12 sps:$4 sm:$0xff]  }
  0x7a   : > { %1182 = vmatprep.subr.bf16.mxu1 %v1995_v22  ;;  %v2133_v22 = vld [vmem:[%s2603_s2 + $0x20] ss:$12 sps:$4 sm:$0xff]  }
  0x7c   : > { %1110 = vmatpush1.bf16.msra.mxu0 %v1992_v23  ;;  %v2136_v23 = vld [vmem:[%s2603_s2 + $0x64] ss:$12 sps:$4 sm:$0xff]  }
  0x7d   : > { %1183 = vmatpush1.bf16.msra.mxu1 %v1994_v24  ;;  %1245 = vmatprep.subr.bf16.mxu0 %v1917_v29  ;;  %v2137_v24 = vld [vmem:[%s2603_s2 + $0x38] ss:$12 sps:$4 sm:$0xff]   ;;  %v2144_v29 = vld [vmem:[%s2603_s2 + $0x94] ss:$12 sps:$4 sm:$0xff]  }
  0x7e   : > { %2011 = vmatmul.mubr.msk.bf16.gmra.mrb[28].mxu0 %vm794_vm0, %v2304_v42  ;;  %1318 = vmatprep.subr.bf16.mxu1 %v1919_v43 }
  0x7f   : > { %2015 = vmatmul.mubr.msk.bf16.gmra.mrb[28].mxu1 %vm794_vm0, %v2304_v42  ;;  %1131 = vmatprep.mubr.bf16.mxu0 %v2195_v0 }
  0x80   : > { %1204 = vmatprep.mubr.bf16.mxu1 %v2195_v0 }
  0x86   : > { %2016 = vmatmul.mubr.msk.bf16.vlgmr.msra.gmra.mrb[32].mxu0 %vm794_vm0, %v2277_v57 }
  0x87   : > { %2020 = vmatmul.mubr.msk.bf16.vlgmr.msra.gmra.mrb[32].mxu1 %vm794_vm0, %v2277_v57  ;;  %1141 = vmatprep.mubr.bf16.mxu0 %v2195_v0 }
  0x88   : > { %1214 = vmatprep.mubr.bf16.mxu1 %v2195_v0  ;;  %1246 = vmatpush1.bf16.msra.mxu0 %v1916_v28  ;;  %v2141_v28 = vld [vmem:[%s2603_s2 + $0x50] ss:$12 sps:$4 sm:$0xff]  }
  0x89   : > { %1247 = vmatprep.subr.bf16.mxu0 %v1933_v33  ;;  %1319 = vmatpush1.bf16.msra.mxu1 %v1918_v41  ;;  %v2149_v33 = vld [vmem:[%s2603_s2 + $0x80] ss:$12 sps:$4 sm:$0xff]  }
  0x8a   : > { %1320 = vmatprep.subr.bf16.mxu1 %v1935_v49 }
  0x8c   : > { %1248 = vmatpush1.bf16.msra.mxu0 %v1932_v32  ;;  %v2148_v32 = vld [vmem:[%s2603_s2 + $0xac] ss:$12 sps:$4 sm:$0xff]  }
  0x8d   : > { %1249 = vmatprep.subr.bf16.mxu0 %v1949_v37  ;;  %1321 = vmatpush1.bf16.msra.mxu1 %v1934_v50 }
  0x8e   : > { %2017 = vmatmul.mubr.msk.bf16.gmra.mrb[36].mxu0 %vm794_vm0, %v2284_v6  ;;  %1322 = vmatprep.subr.bf16.mxu1 %v1951_v58 }
  0x8f   : > { %2021 = vmatmul.mubr.msk.bf16.gmra.mrb[36].mxu1 %vm794_vm0, %v2284_v6  ;;  %1151 = vmatprep.mubr.bf16.mxu0 %v2195_v0 }
  0x90   : > { %1224 = vmatprep.mubr.bf16.mxu1 %v2195_v0  ;;  %1250 = vmatpush1.bf16.msra.mxu0 %v1948_v36 }
  0x91   : > { %1251 = vmatprep.subr.bf16.mxu0 %v1965_v46  ;;  %1323 = vmatpush1.bf16.msra.mxu1 %v1950_v59 }
  0x92   : > { %1324 = vmatprep.subr.bf16.mxu1 %v1967_v3 }
  0x94   : > { %1252 = vmatpush1.bf16.msra.mxu0 %v1964_v45 }
  0x95   : > { %1253 = vmatprep.subr.bf16.mxu0 %v1981_v53  ;;  %1325 = vmatpush1.bf16.msra.mxu1 %v1966_v4 }
  0x96   : > { %2018 = vmatmul.mubr.msk.bf16.gmra.mrb[40].mxu0 %vm794_vm0, %v2295_v25  ;;  %1326 = vmatprep.subr.bf16.mxu1 %v1983_v8 }
  0x97   : > { %2022 = vmatmul.mubr.msk.bf16.gmra.mrb[40].mxu1 %vm794_vm0, %v2295_v25  ;;  %1161 = vmatprep.mubr.bf16.mxu0 %v2195_v0 }
  0x98   : > { %1234 = vmatprep.mubr.bf16.mxu1 %v2195_v0  ;;  %1254 = vmatpush1.bf16.msra.mxu0 %v1980_v54 }
  0x99   : > { %1255 = vmatprep.subr.bf16.mxu0 %v1997_v62  ;;  %1327 = vmatpush1.bf16.msra.mxu1 %v1982_v9 }
  0x9a   : > { %1328 = vmatprep.subr.bf16.mxu1 %v1999_v14 }
  0x9c   : > { %1256 = vmatpush1.bf16.msra.mxu0 %v1996_v63 }
  0x9d   : > { %1635 = vmatprep.subr.bf16.mxu0 %v2122_v10  ;;  %1329 = vmatpush1.bf16.msra.mxu1 %v1998_v15 }
  0x9e   : > { %2019 = vmatmul.mubr.msk.bf16.gmra.mrb[44].mxu0 %vm794_vm0, %v2304_v42  ;;  %2070 = vmatprep.subr.bf16.mxu1 %v2129_v19 }
  0x9f   : > { %2023 = vmatmul.mubr.msk.bf16.gmra.mrb[44].mxu1 %vm794_vm0, %v2304_v42  ;;  %1277 = vmatprep.mubr.bf16.mxu0 %v2195_v0 }
  0xa0   : > { %1350 = vmatprep.mubr.bf16.mxu1 %v2195_v0 }
  0xa6   : > { %2024 = vmatmul.mubr.msk.bf16.vlgmr.msra.gmra.mrb[48].mxu0 %vm794_vm0, %v2277_v57 }
  0xa7   : > { %1287 = vmatprep.mubr.bf16.mxu0 %v2195_v0  ;;  %1636 = vmatpush1.bf16.msra.mxu0 %v2120_v11 }
  0xa8   : > { %1637 = vmatprep.subr.bf16.mxu0 %v2125_v16  ;;  %2028 = vmatmul.mubr.msk.bf16.vlgmr.msra.gmra.mrb[48].mxu1 %vm794_vm0, %v2277_v57  ;;  %v2130_v57 = vld [vmem:[%s2603_s2 + $0x48] ss:$12 sps:$4 sm:$0xff]  }
  0xa9   : > { %2071 = vmatpush3.bf16.msra.mxu1 %v2129_v19  ;;  %1358 = vmatprep.mubr.bf16.mxu1 %v2195_v0 }
  0xaa   : > { %2072 = vmatprep.subr.bf16.mxu1 %v2133_v22 }
  0xab   : > { %1638 = vmatpush1.bf16.msra.mxu0 %v2123_v17 }
  0xac   : > { %1639 = vmatprep.subr.bf16.mxu0 %v2128_v18 }
  0xad   : > { %2073 = vmatpush3.bf16.msra.mxu1 %v2133_v22 }
  0xae   : > { %2025 = vmatmul.mubr.msk.bf16.gmra.mrb[52].mxu0 %vm794_vm0, %v2284_v6  ;;  %2074 = vmatprep.subr.bf16.mxu1 %v2137_v24 }
  0xaf   : > { %1297 = vmatprep.mubr.bf16.mxu0 %v2195_v0  ;;  %1640 = vmatpush1.bf16.msra.mxu0 %v2126_v20 }
  0xb0   : > { %1641 = vmatprep.subr.bf16.mxu0 %v2132_v21  ;;  %2029 = vmatmul.mubr.msk.bf16.gmra.mrb[52].mxu1 %vm794_vm0, %v2284_v6  ;;  %v2138_v6 = vld [vmem:[%s2603_s2 + $0x78] ss:$12 sps:$4 sm:$0xff]  }
  0xb1   : > { %2075 = vmatpush3.bf16.msra.mxu1 %v2137_v24  ;;  %1366 = vmatprep.mubr.bf16.mxu1 %v2195_v0 }
  0xb2   : > { %2076 = vmatprep.subr.bf16.mxu1 %v2141_v28 }
  0xb3   : > { %1642 = vmatpush1.bf16.msra.mxu0 %v2130_v57 }
  0xb4   : > { %1643 = vmatprep.subr.bf16.mxu0 %v2136_v23 }
  0xb5   : > { %2077 = vmatpush3.bf16.msra.mxu1 %v2141_v28 }
  0xb6   : > { %2026 = vmatmul.mubr.msk.bf16.gmra.mrb[56].mxu0 %vm794_vm0, %v2295_v25  ;;  %2078 = vmatprep.subr.bf16.mxu1 %v2145_v30 }
  0xb7   : > { %1307 = vmatprep.mubr.bf16.mxu0 %v2195_v0  ;;  %1644 = vmatpush1.bf16.msra.mxu0 %v2134_v26 }
  0xb8   : > { %1645 = vmatprep.subr.bf16.mxu0 %v2140_v27  ;;  %2030 = vmatmul.mubr.msk.bf16.gmra.mrb[56].mxu1 %vm794_vm0, %v2295_v25  ;;  %v2146_v25 = vld [vmem:[%s2603_s2 + $0xa8] ss:$12 sps:$4 sm:$0xff]  }
  0xb9   : > { %2079 = vmatpush3.bf16.msra.mxu1 %v2145_v30  ;;  %1374 = vmatprep.mubr.bf16.mxu1 %v2195_v0 }
  0xba   : > { %2080 = vmatprep.subr.bf16.mxu1 %v2149_v33 }
  0xbb   : > { %1646 = vmatpush1.bf16.msra.mxu0 %v2138_v6 }
  0xbc   : > { %1647 = vmatprep.subr.bf16.mxu0 %v2144_v29 }
  0xbd   : > { %2081 = vmatpush3.bf16.msra.mxu1 %v2149_v33 }
  0xbe   : > { %2027 = vmatmul.mubr.msk.bf16.gmra.mrb[60].mxu0 %vm794_vm0, %v2304_v42  ;;  %2082 = vmatprep.subr.bf16.mxu1 %v2150_v34 }
  0xbf   : > { %1667 = vmatprep.mubr.bf16.mxu0 %v2195_v0  ;;  %1648 = vmatpush1.bf16.msra.mxu0 %v2142_v31 }
  0xc0   : > { %1649 = vmatprep.subr.bf16.mxu0 %v2148_v32  ;;  %2031 = vmatmul.mubr.msk.bf16.gmra.mrb[60].mxu1 %vm794_vm0, %v2304_v42 }
  0xc1   : > { %2083 = vmatpush3.bf16.msra.mxu1 %v2150_v34 }
  0xc2   : > { %2084 = vmatprep.subr.bf16.mxu1 %v2151_v35 }
  0xc3   : > { %1650 = vmatpush1.bf16.msra.mxu0 %v2146_v25 }
  0xc5   : > { %2085 = vmatpush3.bf16.msra.mxu1 %v2151_v35 }
 0x119   : > { %v841_v36 = vpop.f32.mrb[0].mxu0  ;;  %v2455_v38 = vpop.f32.mrb[0].mxu1 }
 0x11a   : > { %v843_v37 = vpop.f32.mrb[1].mxu0  ;;  %v2457_v40 = vpop.f32.mrb[1].mxu1 }
 0x11b   : > { %v845_v39 = vpop.f32.mrb[2].mxu0  ;;  %v2459_v43 = vpop.f32.mrb[2].mxu1 }
 0x11c   : > { %v847_v41 = vpop.f32.mrb[3].mxu0  ;;  %v2461_v44 = vpop.f32.mrb[3].mxu1 }
 0x121   : > { %v851_v42 = vpop.f32.mrb[4].mxu0  ;;  %v2463_v46 = vpop.f32.mrb[4].mxu1 }
 0x122   : > { %v853_v45 = vpop.f32.mrb[5].mxu0  ;;  %v2465_v48 = vpop.f32.mrb[5].mxu1 }
 0x123   : > { %v855_v47 = vpop.f32.mrb[6].mxu0  ;;  %v2467_v50 = vpop.f32.mrb[6].mxu1 }
 0x124   : > { %v857_v49 = vpop.f32.mrb[7].mxu0  ;;  %v2469_v51 = vpop.f32.mrb[7].mxu1 }
 0x129   : > { %v861_v52 = vpop.f32.mrb[8].mxu0 }
 0x12a   : > { %v863_v53 = vpop.f32.mrb[9].mxu0  ;;  %v2471_v54 = vpop.f32.mrb[8].mxu1 }
 0x12b   : > { %v865_v55 = vpop.f32.mrb[10].mxu0  ;;  %v2473_v56 = vpop.f32.mrb[9].mxu1 }
 0x12c   : > { %v867_v58 = vpop.f32.mrb[11].mxu0  ;;  %v2475_v59 = vpop.f32.mrb[10].mxu1 }
 0x12d   : > { %v2477_v60 = vpop.f32.mrb[11].mxu1 }
 0x131   : > { %v871_v61 = vpop.f32.mrb[12].mxu0 }
 0x132   : > { %v873_v62 = vpop.f32.mrb[13].mxu0  ;;  %v2479_v63 = vpop.f32.mrb[12].mxu1 }
 0x133   : > { %v875_v1 = vpop.f32.mrb[14].mxu0  ;;  %v2481_v2 = vpop.f32.mrb[13].mxu1 }
 0x134   : > { %v877_v3 = vpop.f32.mrb[15].mxu0  ;;  %v2483_v4 = vpop.f32.mrb[14].mxu1 }
 0x135   : > { %v2485_v5 = vpop.f32.mrb[15].mxu1 }
 0x139   : > { %v987_v7 = vpop.f32.mrb[16].mxu0 }
 0x13a   : > { %v1060_v8 = vpop.f32.mrb[16].mxu1  ;;  %v2487_v9 = vpop.f32.mrb[17].mxu0 }
 0x13b   : > { %v1383_v10 = vmul.f32 %v1060_v8, %v841_v36  ;;  %v1062_v11 = vpop.f32.mrb[17].mxu1  ;;  %v2489_v12 = vpop.f32.mrb[18].mxu0 }
 0x13c   : > { %v1384_v13 = vmul.f32 %v1062_v11, %v843_v37  ;;  %v1064_v14 = vpop.f32.mrb[18].mxu1  ;;  %v2491_v15 = vpop.f32.mrb[19].mxu0 }
 0x13d   : > { %v1389_v16 = vmul.f32 %v1064_v14, %v845_v39  ;;  %v1066_v17 = vpop.f32.mrb[19].mxu1 }
 0x13e   : > { %v1431_v18 = vadd.f32 %v1384_v13, %v1383_v10  ;;  %v1390_v19 = vmul.f32 %v1066_v17, %v847_v41 }
 0x140   : > { %v1432_v20 = vadd.f32 %v1390_v19, %v1389_v16 }
 0x141   : > { %v2493_v21 = vpop.f32.mrb[20].mxu0 }
 0x142   : > { %v1070_v22 = vpop.f32.mrb[20].mxu1  ;;  %v2495_v57 = vpop.f32.mrb[21].mxu0 }
 0x143   : > { %v1395_v23 = vmul.f32 %v1070_v22, %v851_v42  ;;  %v1072_v24 = vpop.f32.mrb[21].mxu1  ;;  %v2497_v26 = vpop.f32.mrb[22].mxu0 }
 0x144   : > { %v1396_v27 = vmul.f32 %v1072_v24, %v853_v45  ;;  %v1074_v28 = vpop.f32.mrb[22].mxu1  ;;  %v2499_v6 = vpop.f32.mrb[23].mxu0 }
 0x145   : > { %v1401_v29 = vmul.f32 %v1074_v28, %v855_v47  ;;  %v1076_v30 = vpop.f32.mrb[23].mxu1 }
 0x146   : > { %v2501_v31 = vadd.f32 %v1396_v27, %v1395_v23  ;;  %v1402_v32 = vmul.f32 %v1076_v30, %v857_v49 }
 0x148   : > { %v2503_v33 = vadd.f32 %v1402_v32, %v1401_v29 }
 0x149   : > { %v2505_v25 = vpop.f32.mrb[24].mxu0 }
 0x14a   : > { %v1080_v34 = vpop.f32.mrb[24].mxu1  ;;  %v2507_v35 = vpop.f32.mrb[25].mxu0 }
 0x14b   : > { %v1407_v36 = vmul.f32 %v1080_v34, %v861_v52  ;;  %v1082_v37 = vpop.f32.mrb[25].mxu1  ;;  %v2509_v39 = vpop.f32.mrb[26].mxu0 }
 0x14c   : > { %v1408_v41 = vmul.f32 %v1082_v37, %v863_v53  ;;  %v1084_v42 = vpop.f32.mrb[26].mxu1  ;;  %v2511_v45 = vpop.f32.mrb[27].mxu0 }
 0x14d   : > { %v1413_v47 = vmul.f32 %v1084_v42, %v865_v55  ;;  %v1086_v8 = vpop.f32.mrb[27].mxu1 }
 0x14e   : > { %v2513_v10 = vadd.f32 %v1408_v41, %v1407_v36  ;;  %v1414_v49 = vmul.f32 %v1086_v8, %v867_v58 }
 0x150   : > { %v2515_v11 = vadd.f32 %v1414_v49, %v1413_v47 }
 0x151   : > { %v2517_v13 = vpop.f32.mrb[28].mxu0 }
 0x152   : > { %v1090_v14 = vpop.f32.mrb[28].mxu1  ;;  %v2519_v16 = vpop.f32.mrb[29].mxu0 }
 0x153   : > { %v1419_v52 = vmul.f32 %v1090_v14, %v871_v61  ;;  %v1092_v17 = vpop.f32.mrb[29].mxu1  ;;  %v2521_v19 = vpop.f32.mrb[30].mxu0 }
 0x154   : > { %v1420_v53 = vmul.f32 %v1092_v17, %v873_v62  ;;  %v1094_v22 = vpop.f32.mrb[30].mxu1  ;;  %v2523_v23 = vpop.f32.mrb[31].mxu0 }
 0x155   : > { %v1425_v55 = vmul.f32 %v1094_v22, %v875_v1  ;;  %v1096_v24 = vpop.f32.mrb[31].mxu1 }
 0x156   : > { %v2525_v27 = vadd.f32 %v1420_v53, %v1419_v52  ;;  %v1426_v58 = vmul.f32 %v1096_v24, %v877_v3 }
 0x158   : > { %v2527_v28 = vadd.f32 %v1426_v58, %v1425_v55 }
 0x159   : > { %v1133_v29 = vpop.f32.mrb[32].mxu0 }
 0x15a   : > { %v1385_v30 = vmul.f32 %v1133_v29, %v2455_v38  ;;  %v1206_v32 = vpop.f32.mrb[32].mxu1  ;;  %v1135_v34 = vpop.f32.mrb[33].mxu0 }
 0x15b   : > { %v1387_v61 = vmul.f32 %v1206_v32, %v987_v7  ;;  %v1386_v36 = vmul.f32 %v1135_v34, %v2457_v40  ;;  %v1208_v37 = vpop.f32.mrb[33].mxu1  ;;  %v1137_v62 = vpop.f32.mrb[34].mxu0 }
 0x15c   : > { %v1439_v41 = vadd.f32 %v1431_v18, %v1385_v30  ;;  %v1388_v42 = vmul.f32 %v1208_v37, %v2487_v9  ;;  %v1391_v1 = vmul.f32 %v1137_v62, %v2459_v43  ;;  %v1210_v47 = vpop.f32.mrb[34].mxu1  ;;  %v1139_v8 = vpop.f32.mrb[35].mxu0 }
 0x15d   : > { %v1393_v3 = vmul.f32 %v1210_v47, %v2489_v12  ;;  %v1392_v49 = vmul.f32 %v1139_v8, %v2461_v44  ;;  %v1212_v14 = vpop.f32.mrb[35].mxu1 }
 0x15e   : > { %v1447_v38 = vadd.f32 %v1439_v41, %v1386_v36  ;;  %v1440_v52 = vadd.f32 %v1432_v20, %v1391_v1  ;;  %v1394_v7 = vmul.f32 %v1212_v14, %v2491_v15 }
 0x160   : > { %v1455_v17 = vadd.f32 %v1447_v38, %v1387_v61  ;;  %v1448_v40 = vadd.f32 %v1440_v52, %v1392_v49 }
 0x161   : > { %v1143_v53 = vpop.f32.mrb[36].mxu0 }
 0x162   : > { %v1463_v22 = vadd.f32 %v1455_v17, %v1388_v42  ;;  %v1456_v18 = vadd.f32 %v1448_v40, %v1393_v3  ;;  %v1397_v9 = vmul.f32 %v1143_v53, %v2463_v46  ;;  %v1216_v55 = vpop.f32.mrb[36].mxu1  ;;  %v1145_v43 = vpop.f32.mrb[37].mxu0 }
 0x163   : > { %v1399_v24 = vmul.f32 %v1216_v55, %v2493_v21  ;;  %v1398_v12 = vmul.f32 %v1145_v43, %v2465_v48  ;;  %v1218_v58 = vpop.f32.mrb[37].mxu1  ;;  %v1147_v44 = vpop.f32.mrb[38].mxu0 }
 0x164   : > { %v1464_v29 = vadd.f32 %v1456_v18, %v1394_v7  ;;  %v1441_v20 = vadd.f32 %v2501_v31, %v1397_v9  ;;  %v1400_v15 = vmul.f32 %v1218_v58, %v2495_v57  ;;  %v1403_v30 = vmul.f32 %v1147_v44, %v2467_v50  ;;  %v1220_v32 = vpop.f32.mrb[38].mxu1  ;;  %v1149_v34 = vpop.f32.mrb[39].mxu0 }
 0x165   : > { %v1405_v61 = vmul.f32 %v1220_v32, %v2497_v26  ;;  %v1404_v46 = vmul.f32 %v1149_v34, %v2469_v51  ;;  %v1222_v36 = vpop.f32.mrb[39].mxu1 }
 0x166   : > { %v1471_v37 = vpack.c.bf16 %v1464_v29, %v1463_v22  ;;  %v1449_v21 = vadd.f32 %v1441_v20, %v1398_v12  ;;  %v1442_v48 = vadd.f32 %v2503_v33, %v1403_v30  ;;  %v1406_v62 = vmul.f32 %v1222_v36, %v2499_v6 }
 0x168   : > { %v1457_v41 = vadd.f32 %v1449_v21, %v1399_v24  ;;  %v1450_v42 = vadd.f32 %v1442_v48, %v1404_v46  ;;  %1668 = vmatmul.mubr.bf16.vlgmr.msra.gmra.mrb[64].mxu0 %v1471_v37  ;;  %2086 = vmatprep.mubr.bf16.mxu1 %v1471_v37 }
 0x169   : > { %v1153_v57 = vpop.f32.mrb[40].mxu0  ;;  %1677 = vmatprep.mubr.bf16.mxu0 %v2195_v0 }
 0x16a   : > { %v1465_v50 = vadd.f32 %v1457_v41, %v1400_v15  ;;  %v1458_v31 = vadd.f32 %v1450_v42, %v1405_v61  ;;  %v1409_v26 = vmul.f32 %v1153_v57, %v2471_v54  ;;  %v1226_v1 = vpop.f32.mrb[40].mxu1  ;;  %v1155_v51 = vpop.f32.mrb[41].mxu0 }
 0x16b   : > { %v1411_v47 = vmul.f32 %v1226_v1, %v2505_v25  ;;  %v1410_v8 = vmul.f32 %v1155_v51, %v2473_v56  ;;  %v1228_v33 = vpop.f32.mrb[41].mxu1  ;;  %v1157_v3 = vpop.f32.mrb[42].mxu0 }
 0x16c   : > { %v1466_v6 = vadd.f32 %v1458_v31, %v1406_v62  ;;  %v1443_v49 = vadd.f32 %v2513_v10, %v1409_v26  ;;  %v1412_v14 = vmul.f32 %v1228_v33, %v2507_v35  ;;  %v1415_v38 = vmul.f32 %v1157_v3, %v2475_v59  ;;  %v1230_v52 = vpop.f32.mrb[42].mxu1  ;;  %v1159_v7 = vpop.f32.mrb[43].mxu0 }
 0x16d   : > { %v1417_v17 = vmul.f32 %v1230_v52, %v2509_v39  ;;  %v1416_v54 = vmul.f32 %v1159_v7, %v2477_v60  ;;  %v1232_v40 = vpop.f32.mrb[43].mxu1 }
 0x16e   : > { %v1451_v53 = vadd.f32 %v1443_v49, %v1410_v8  ;;  %v1444_v25 = vadd.f32 %v2515_v11, %v1415_v38  ;;  %v1418_v56 = vmul.f32 %v1232_v40, %v2511_v45  ;;  %v1472_v22 = vpack.c.bf16 %v1466_v6, %v1465_v50 }
 0x170   : > { %v1459_v18 = vadd.f32 %v1451_v53, %v1411_v47  ;;  %v1452_v9 = vadd.f32 %v1444_v25, %v1416_v54  ;;  %1678 = vmatmul.mubr.bf16.gmra.mrb[68].mxu0 %v1472_v22  ;;  %2087 = vmatmul.mubr.bf16.vlgmr.msra.gmra.mrb[64].mxu1 %v1472_v22 }
 0x171   : > { %v1163_v35 = vpop.f32.mrb[44].mxu0  ;;  %1687 = vmatprep.mubr.bf16.mxu0 %v2195_v0 }
 0x172   : > { %v1467_v59 = vadd.f32 %v1459_v18, %v1412_v14  ;;  %v1460_v10 = vadd.f32 %v1452_v9, %v1417_v17  ;;  %v1421_v39 = vmul.f32 %v1163_v35, %v2479_v63  ;;  %v1236_v55 = vpop.f32.mrb[44].mxu1  ;;  %v1165_v60 = vpop.f32.mrb[45].mxu0 }
 0x173   : > { %v1423_v43 = vmul.f32 %v1236_v55, %v2517_v13  ;;  %v1422_v11 = vmul.f32 %v1165_v60, %v2481_v2  ;;  %v1238_v24 = vpop.f32.mrb[45].mxu1  ;;  %v1167_v45 = vpop.f32.mrb[46].mxu0 }
 0x174   : > { %v1468_v12 = vadd.f32 %v1460_v10, %v1418_v56  ;;  %v1445_v58 = vadd.f32 %v2525_v27, %v1421_v39  ;;  %v1424_v44 = vmul.f32 %v1238_v24, %v2519_v16  ;;  %v1427_v29 = vmul.f32 %v1167_v45, %v2483_v4  ;;  %v1240_v20 = vpop.f32.mrb[46].mxu1  ;;  %v1169_v15 = vpop.f32.mrb[47].mxu0 }
 0x175   : > { %v1429_v30 = vmul.f32 %v1240_v20, %v2521_v19  ;;  %v1428_v63 = vmul.f32 %v1169_v15, %v2485_v5  ;;  %v1242_v32 = vpop.f32.mrb[47].mxu1 }
 0x176   : > { %v1453_v34 = vadd.f32 %v1445_v58, %v1422_v11  ;;  %v1446_v13 = vadd.f32 %v2527_v28, %v1427_v29  ;;  %v1430_v2 = vmul.f32 %v1242_v32, %v2523_v23  ;;  %v1473_v61 = vpack.c.bf16 %v1468_v12, %v1467_v59 }
 0x178   : > { %v1461_v46 = vadd.f32 %v1453_v34, %v1423_v43  ;;  %v1454_v36 = vadd.f32 %v1446_v13, %v1428_v63  ;;  %1688 = vmatmul.mubr.bf16.gmra.mrb[72].mxu0 %v1473_v61  ;;  %2090 = vmatprep.mubr.bf16.mxu1 %v1473_v61 }
 0x179   : > { %1697 = vmatprep.mubr.bf16.mxu0 %v2195_v0  ;;  %v1279_v5 = vpop.f32.mrb[48].mxu0 }
 0x17a   : > { %v1469_v4 = vadd.f32 %v1461_v46, %v1424_v44  ;;  %v1462_v16 = vadd.f32 %v1454_v36, %v1429_v30  ;;  %v1281_v19 = vpop.f32.mrb[49].mxu0 }
 0x17b   : > { %v1283_v21 = vpop.f32.mrb[50].mxu0  ;;  %v1352_v23 = vpop.f32.mrb[48].mxu1 }
 0x17c   : > { %v1470_v27 = vadd.f32 %v1462_v16, %v1430_v2  ;;  %v1285_v48 = vpop.f32.mrb[51].mxu0  ;;  %v1354_v42 = vpop.f32.mrb[49].mxu1 }
 0x17d   : > { %v1355_v50 = vpop.f32.mrb[50].mxu1 }
 0x17e   : > { %v1474_v37 = vpack.c.bf16 %v1470_v27, %v1469_v4  ;;  %v1357_v31 = vpop.f32.mrb[51].mxu1 }
 0x180   : > { %1698 = vmatmul.mubr.bf16.gmra.mrb[76].mxu0 %v1474_v37  ;;  %2091 = vmatmul.mubr.bf16.gmra.mrb[68].mxu1 %v1474_v37 }
 0x181   : > { %v1289_v28 = vpop.f32.mrb[52].mxu0 }
 0x182   : > { %v1291_v62 = vpop.f32.mrb[53].mxu0 }
 0x183   : > { %v1293_v41 = vpop.f32.mrb[54].mxu0  ;;  %v1360_v1 = vpop.f32.mrb[52].mxu1 }
 0x184   : > { %v1295_v57 = vpop.f32.mrb[55].mxu0  ;;  %v1362_v47 = vpop.f32.mrb[53].mxu1 }
 0x185   : > { %v1363_v33 = vpop.f32.mrb[54].mxu1 }
 0x186   : > { %v1365_v3 = vpop.f32.mrb[55].mxu1 }
 0x189   : > { %v1299_v26 = vpop.f32.mrb[56].mxu0 }
 0x18a   : > { %v1301_v0 = vpop.f32.mrb[57].mxu0 }
 0x18b   : > { %v1303_v51 = vpop.f32.mrb[58].mxu0  ;;  %v2571_v14 = vpop.f32.mrb[56].mxu1 }
 0x18c   : > { %v1305_v8 = vpop.f32.mrb[59].mxu0  ;;  %v1370_v52 = vpop.f32.mrb[57].mxu1 }
 0x18d   : > { %v2577_v17 = vpop.f32.mrb[58].mxu1 }
 0x18e   : > { %v1373_v54 = vpop.f32.mrb[59].mxu1 }
 0x191   : > { %v1309_v6 = vpop.f32.mrb[60].mxu0 }
 0x192   : > { %v2569_v49 = vpop.f32.mrb[61].mxu0 }
 0x193   : > { %v2573_v38 = vpop.f32.mrb[62].mxu0  ;;  %v1376_v40 = vpop.f32.mrb[60].mxu1 }
 0x194   : > { %v2575_v7 = vpop.f32.mrb[63].mxu0  ;;  %v1378_v53 = vpop.f32.mrb[61].mxu1 }
 0x195   : > { %v1379_v25 = vpop.f32.mrb[62].mxu1 }
 0x196   : > { %v1381_v56 = vpop.f32.mrb[63].mxu1 }
 0x23b   : > { %v1669_v22 = vpop.f32.mrb[64].mxu0 }
 0x23c   : > { %v1773_v18 = vmul.f32 %v1669_v22, %v1279_v5  ;;  %v1671_v9 = vpop.f32.mrb[65].mxu0 }
 0x23d   : > { %v1774_v35 = vmul.f32 %v1671_v9, %v1281_v19  ;;  %v1673_v59 = vpop.f32.mrb[66].mxu0 }
 0x23e   : > { %v1776_v10 = vmul.f32 %v1673_v59, %v1283_v21  ;;  %v1675_v39 = vpop.f32.mrb[67].mxu0 }
 0x23f   : > { %v1797_v55 = vadd.f32 %v1774_v35, %v1773_v18  ;;  %v1777_v60 = vmul.f32 %v1675_v39, %v1285_v48 }
 0x241   : > { %v1798_v43 = vadd.f32 %v1777_v60, %v1776_v10 }
 0x243   : > { %v1679_v11 = vpop.f32.mrb[68].mxu0  ;;  %v2088_v24 = vpop.f32.mrb[64].mxu1 }
 0x244   : > { %v1779_v45 = vmul.f32 %v1679_v11, %v1289_v28  ;;  %v1781_v12 = vmul.f32 %v2088_v24, %v1360_v1  ;;  %v1681_v58 = vpop.f32.mrb[69].mxu0  ;;  %v1742_v44 = vpop.f32.mrb[65].mxu1 }
 0x245   : > { %v1780_v29 = vmul.f32 %v1681_v58, %v1291_v62  ;;  %v1775_v20 = vmul.f32 %v1742_v44, %v1352_v23  ;;  %v1683_v15 = vpop.f32.mrb[70].mxu0  ;;  %v2089_v30 = vpop.f32.mrb[66].mxu1 }
 0x246   : > { %v1782_v63 = vmul.f32 %v1683_v15, %v1293_v41  ;;  %v1784_v32 = vmul.f32 %v2089_v30, %v1363_v33  ;;  %v1685_v34 = vpop.f32.mrb[71].mxu0  ;;  %v1745_v13 = vpop.f32.mrb[67].mxu1 }
 0x247   : > { %v1799_v2 = vadd.f32 %v1780_v29, %v1779_v45  ;;  %v1805_v61 = vadd.f32 %v1797_v55, %v1775_v20  ;;  %v1783_v46 = vmul.f32 %v1685_v34, %v1295_v57  ;;  %v1778_v36 = vmul.f32 %v1745_v13, %v1355_v50 }
 0x249   : > { %v1807_v4 = vadd.f32 %v1799_v2, %v1781_v12  ;;  %1813 = vst [vmem:[%s2583_s10] sm:$0xff] %v1805_v61  ;;  %v1800_v16 = vadd.f32 %v1783_v46, %v1782_v63  ;;  %v1806_v27 = vadd.f32 %v1798_v43, %v1778_v36 }
 0x24b   : > { %1815 = vst [vmem:[%s2583_s10 + $0x10] sm:$0xff] %v1807_v4  ;;  %v1808_v37 = vadd.f32 %v1800_v16, %v1784_v32  ;;  %1814 = vst [vmem:[%s2583_s10 + $0x8] sm:$0xff] %v1806_v27  ;;  %v1689_v5 = vpop.f32.mrb[72].mxu0 }
 0x24c   : > { %v1785_v19 = vmul.f32 %v1689_v5, %v1299_v26  ;;  %v1691_v21 = vpop.f32.mrb[73].mxu0 }
 0x24d   : > { %1816 = vst [vmem:[%s2583_s10 + $0x18] sm:$0xff] %v1808_v37  ;;  %v1786_v48 = vmul.f32 %v1691_v21, %v1301_v0  ;;  %v1693_v28 = vpop.f32.mrb[74].mxu0 }
 0x24e   : > { %v1788_v62 = vmul.f32 %v1693_v28, %v1303_v51  ;;  %v1695_v23 = vpop.f32.mrb[75].mxu0 }
 0x24f   : > { %v1801_v41 = vadd.f32 %v1786_v48, %v1785_v19  ;;  %v1789_v42 = vmul.f32 %v1695_v23, %v1305_v8 }
 0x251   : > { %v1802_v31 = vadd.f32 %v1789_v42, %v1788_v62 }
 0x253   : > { %v1699_v57 = vpop.f32.mrb[76].mxu0  ;;  %v2092_v50 = vpop.f32.mrb[68].mxu1 }
 0x254   : > { %v1791_v1 = vmul.f32 %v1699_v57, %v1309_v6  ;;  %v1793_v47 = vmul.f32 %v2092_v50, %v1376_v40  ;;  %v1701_v33 = vpop.f32.mrb[77].mxu0  ;;  %v1758_v3 = vpop.f32.mrb[69].mxu1 }
 0x255   : > { %v1792_v52 = vmul.f32 %v1701_v33, %v2569_v49  ;;  %v1787_v26 = vmul.f32 %v1758_v3, %v2571_v14  ;;  %v1703_v54 = vpop.f32.mrb[78].mxu0  ;;  %v2093_v0 = vpop.f32.mrb[70].mxu1 }
 0x256   : > { %v1794_v51 = vmul.f32 %v1703_v54, %v2573_v38  ;;  %v1796_v8 = vmul.f32 %v2093_v0, %v1379_v25  ;;  %v1705_v53 = vpop.f32.mrb[79].mxu0  ;;  %v1761_v56 = vpop.f32.mrb[71].mxu1 }
 0x257   : > { %v1803_v22 = vadd.f32 %v1792_v52, %v1791_v1  ;;  %v1809_v6 = vadd.f32 %v1801_v41, %v1787_v26  ;;  %v1795_v40 = vmul.f32 %v1705_v53, %v2575_v7  ;;  %v1790_v18 = vmul.f32 %v1761_v56, %v2577_v17 }
 0x259   : > { %v1811_v9 = vadd.f32 %v1803_v22, %v1793_v47  ;;  %1817 = vst [vmem:[%s2583_s10 + $0x20] sm:$0xff] %v1809_v6  ;;  %v1804_v49 = vadd.f32 %v1795_v40, %v1794_v51  ;;  %v1810_v35 = vadd.f32 %v1802_v31, %v1790_v18 }
 0x25b   : > { %1819 = vst [vmem:[%s2583_s10 + $0x30] sm:$0xff] %v1811_v9  ;;  %v1812_v14 = vadd.f32 %v1804_v49, %v1796_v8  ;;  %1818 = vst [vmem:[%s2583_s10 + $0x28] sm:$0xff] %v1810_v35 }
 0x25d   : > { %1820 = vst [vmem:[%s2583_s10 + $0x38] sm:$0xff] %v1812_v14 }
 0x25e PF: > { %s14_s12 = sadd.s32 1, %s2190_s12  }
 0x25f   : > { %p11_p3 = scmp.ge.s32.totalorder %s14_s12, 4  }
 0x261   :  { %13 = sbr.rel (!%p11_p3) target bundleno = 1 (0x1), region = 67 }
 0x268   :  { %1843 = vsyncpa [#allocation3], 1 }
 0x269   :  { %1845 = vsyncpa [#allocation3 + $0x1], 1 }

</bundles_post_ra>
